<compile_context>
chip_gen: v6e
topology: v6e:2x2x1
jax: 0.10.0
libtpu: 0.0.40
codegen_flags: <defaults>
</compile_context>

<pallas_src>
import jax
import jax.numpy as jnp
from jax.experimental import pallas as pl
from jax.experimental.pallas import tpu as pltpu


def single_layer_kernel(x_ref, t_ref, scale_ref, shift_ref, o_ref):
    """One (batch, row-block) tile of ReLU(Conv3x3(BN(x))).

    x_ref:     (1, 1, TH+2, (W+2)*C)  input row block incl. 1-row halo, W pre-padded
    t_ref:     (3, (W+2)*C, W*G)      block-Toeplitz conv weights, one per kernel row
    scale_ref: (1, (W+2)*C)           folded BN scale, tiled along the lane axis
    shift_ref: (1, (W+2)*C)           folded BN shift, tiled; zero on the W-pad lanes
    o_ref:     (1, TH, W*G)           lane-dense new-feature slab
    """
    th = o_ref.shape[1]
    wg = o_ref.shape[2]

    # BatchNorm (eval mode) as a lane-dense affine (single VPU FMA on 72 lanes).
    a = x_ref[0, 0] * scale_ref[0] + shift_ref[0]          # (TH+2, (W+2)*C)

    # Rows that are the *global* zero padding (top halo row of the first block,
    # bottom halo row of the last block) must stay zero: padding happens after BN.
    rows = jax.lax.broadcasted_iota(jnp.int32, a.shape, 0)
    top = (pl.program_id(1) == 0) & (rows == 0)
    bot = (pl.program_id(1) == pl.num_programs(1) - 1) & (rows == th + 1)
    a = jnp.where(top | bot, 0.0, a)

    # 3x3 conv == 3 block-Toeplitz matmuls (one per kernel row kh), f32 accumulate.
    # (bf16 operands would be a drop-in on v6e/v7x once C/G reach MXU-bound sizes;
    #  kept f32 here for exactness at these tiny channel counts.)
    acc = jnp.zeros((th, wg), jnp.float32)
    for kh in range(3):
        acc = acc + jnp.dot(a[kh:kh + th, :], t_ref[kh],
                            preferred_element_type=jnp.float32)

    # ReLU; Dropout2d(p=0.1) is identity in eval mode.
    # TODO(synk): training-mode Dropout2d (random per-channel zeroing) not implemented.
    o_ref[0] = jnp.maximum(acc, 0.0)


def single_layer(x_nchw, w_oihw, gamma, beta, running_mean, running_var,
                 eps=1e-5, row_block=8):
    """NCHW in, NCHW out (matches the PyTorch module, eval mode)."""
    N, C, H, W = x_nchw.shape
    G = w_oihw.shape[0]
    TH = row_block if H % row_block == 0 else H
    NB = H // TH
    PW = W + 2                     # W padded by 1 pixel each side
    PWC = PW * C                   # lane width of the input view
    WG = W * G                     # lane width of the output slab

    xf = x_nchw.astype(jnp.float32)

    # --- input: NHWC, pad W by 1, flatten (W+2, C) onto the lane axis ---
    x_nhwc = jnp.transpose(xf, (0, 2, 3, 1))                         # (N, H, W, C)
    x_wpad = jnp.pad(x_nhwc, ((0, 0), (0, 0), (1, 1), (0, 0)))       # (N, H, W+2, C)
    x2d = x_wpad.reshape(N, H, PWC)                                  # (N, H, PWC)
    # pad H by one zero row each side, then cut into row blocks carrying their halo
    x2d_hpad = jnp.pad(x2d, ((0, 0), (1, 1), (0, 0)))                # (N, H+2, PWC)
    x_blocks = jnp.stack(
        [x2d_hpad[:, rb * TH: rb * TH + TH + 2, :] for rb in range(NB)], axis=1
    )                                                                # (N, NB, TH+2, PWC)

    # --- folded BN affine, tiled along the lane axis ---
    # shift is zeroed on the W-pad lanes so zero padding stays zero after the affine
    # (padding is applied after BN in the PyTorch module).
    inv_std = 1.0 / jnp.sqrt(running_var.astype(jnp.float32) + eps)
    scale = gamma.astype(jnp.float32) * inv_std
    shift = beta.astype(jnp.float32) - running_mean.astype(jnp.float32) * scale
    scale_t = jnp.tile(scale, PW).reshape(1, PWC)
    wmask = jnp.ones((PW, C), jnp.float32).at[0].set(0.0).at[PW - 1].set(0.0)
    shift_t = (jnp.tile(shift, PW).reshape(PW, C) * wmask).reshape(1, PWC)

    # --- block-Toeplitz conv weights: one (PWC, W*G) matrix per kernel row kh ---
    # T[kh][(w + kw)*C + c, w*G + g] = conv_w[g, c, kh, kw]
    w_kkcg = jnp.transpose(w_oihw.astype(jnp.float32), (2, 3, 1, 0))  # (3, 3, C, G)
    t_rows = []
    for kh in range(3):
        band = w_kkcg[kh].reshape(3 * C, G)                           # (kw*C + c, g)
        t = jnp.zeros((PWC, WG), jnp.float32)
        for wo in range(W):
            t = t.at[wo * C: wo * C + 3 * C, wo * G: (wo + 1) * G].set(band)
        t_rows.append(t)
    t_all = jnp.stack(t_rows)                                         # (3, PWC, WG)

    feat2d = pl.pallas_call(
        single_layer_kernel,
        out_shape=jax.ShapeDtypeStruct((N, H, WG), jnp.float32),
        grid_spec=pltpu.PrefetchScalarGridSpec(
            num_scalar_prefetch=0,
            grid=(N, NB),
            in_specs=[
                pl.BlockSpec((1, 1, TH + 2, PWC), lambda n, rb: (n, rb, 0, 0)),
                pl.BlockSpec((3, PWC, WG), lambda n, rb: (0, 0, 0)),
                pl.BlockSpec((1, PWC), lambda n, rb: (0, 0)),
                pl.BlockSpec((1, PWC), lambda n, rb: (0, 0)),
            ],
            out_specs=pl.BlockSpec((1, TH, WG), lambda n, rb: (n, rb, 0)),
        ),
        compiler_params=pltpu.CompilerParams(
            dimension_semantics=("parallel", "parallel")),
    )(x_blocks, t_all, scale_t, shift_t)

    # un-flatten the lane-dense (H, W*G) slab and concat with x in the wrapper
    feat = jnp.transpose(feat2d.reshape(N, H, W, G), (0, 3, 1, 2))    # (N, G, H, W)
    return jnp.concatenate([xf, feat], axis=1)                        # (N, C+G, H, W)


def _reference(x_nchw, w_oihw, gamma, beta, running_mean, running_var, eps=1e-5):
    """Pure-JAX reference (eval-mode BN + conv + relu + concat) for validation."""
    x = x_nchw.astype(jnp.float32)
    inv_std = 1.0 / jnp.sqrt(running_var + eps)
    xb = (x - running_mean[None, :, None, None]) * (gamma * inv_std)[None, :, None, None] \
         + beta[None, :, None, None]
    conv = jax.lax.conv_general_dilated(
        xb, w_oihw.astype(jnp.float32),
        window_strides=(1, 1), padding=((1, 1), (1, 1)),
        dimension_numbers=("NCHW", "OIHW", "NCHW"))
    return jnp.concatenate([x, jnp.maximum(conv, 0.0)], axis=1)


if __name__ == "__main__":
    N, C, H, W = 2, 4, 16, 16        # batch, nChannels, spatial
    G = 8                            # growthRate

    key = jax.random.PRNGKey(0)
    kx, kw, kg, kb, km, kv = jax.random.split(key, 6)

    x = jax.random.normal(kx, (N, C, H, W), dtype=jnp.float32)
    conv_w = jax.random.normal(kw, (G, C, 3, 3), dtype=jnp.float32) * 0.1
    gamma = 1.0 + 0.1 * jax.random.normal(kg, (C,), dtype=jnp.float32)
    beta = 0.1 * jax.random.normal(kb, (C,), dtype=jnp.float32)
    running_mean = 0.05 * jax.random.normal(km, (C,), dtype=jnp.float32)
    running_var = 1.0 + 0.1 * jax.random.uniform(kv, (C,), dtype=jnp.float32)

    fn = jax.jit(single_layer)
    out = fn(x, conv_w, gamma, beta, running_mean, running_var)
    out = jax.block_until_ready(out)

    ref = _reference(x, conv_w, gamma, beta, running_mean, running_var)
    assert out.shape == (N, C + G, H, W)
    assert jnp.allclose(out, ref, atol=1e-4, rtol=1e-4), \
        float(jnp.max(jnp.abs(out - ref)))

    print("KERNEL_OK")
</pallas_src>

<mosaic_0001>
module attributes {stable_mosaic.version = 11 : i64} {
  func.func @single_layer_kernel(%arg0: i32, %arg1: i32, %arg2: memref<1x1x10x72xf32, #tpu.memory_space<vmem>>, %arg3: memref<3x72x128xf32, #tpu.memory_space<vmem>>, %arg4: memref<1x72xf32, #tpu.memory_space<vmem>>, %arg5: memref<1x72xf32, #tpu.memory_space<vmem>>, %arg6: memref<1x8x128xf32, #tpu.memory_space<vmem>>) attributes {dimension_semantics = [#tpu.dimension_semantics<parallel>, #tpu.dimension_semantics<parallel>], iteration_bounds = array<i64: 2, 2>, scalar_prefetch = 0 : i64, scratch_operands = 0 : i64, tpu.core_type = #tpu.core_type<tc>, window_params = [{transform_indices = @transform_0, window_bounds = array<i64: 1, 1, 10, 72>}, {pipeline_mode = #tpu.pipeline_mode<synchronous>, transform_indices = @transform_1, window_bounds = array<i64: 3, 72, 128>}, {pipeline_mode = #tpu.pipeline_mode<synchronous>, transform_indices = @transform_2, window_bounds = array<i64: 1, 72>}, {pipeline_mode = #tpu.pipeline_mode<synchronous>, transform_indices = @transform_3, window_bounds = array<i64: 1, 72>}, {transform_indices = @transform_4, window_bounds = array<i64: 1, 8, 128>}]} {
    %c0 = arith.constant 0 : index
    %c0_0 = arith.constant 0 : index
    %c0_1 = arith.constant 0 : index
    %c0_2 = arith.constant 0 : index
    %0 = vector.load %arg2[%c0, %c0_0, %c0_1, %c0_2] : memref<1x1x10x72xf32, #tpu.memory_space<vmem>>, vector<1x1x10x72xf32>
    %1 = vector.shape_cast %0 : vector<1x1x10x72xf32> to vector<10x72xf32>
    %c0_3 = arith.constant 0 : index
    %c0_4 = arith.constant 0 : index
    %2 = vector.load %arg4[%c0_3, %c0_4] : memref<1x72xf32, #tpu.memory_space<vmem>>, vector<1x72xf32>
    %3 = vector.shape_cast %2 : vector<1x72xf32> to vector<72xf32>
    %4 = vector.shape_cast %3 : vector<72xf32> to vector<1x72xf32>
    %5 = vector.broadcast %4 : vector<1x72xf32> to vector<10x72xf32>
    %6 = arith.mulf %1, %5 : vector<10x72xf32>
    %c0_5 = arith.constant 0 : index
    %c0_6 = arith.constant 0 : index
    %7 = vector.load %arg5[%c0_5, %c0_6] : memref<1x72xf32, #tpu.memory_space<vmem>>, vector<1x72xf32>
    %8 = vector.shape_cast %7 : vector<1x72xf32> to vector<72xf32>
    %9 = vector.shape_cast %8 : vector<72xf32> to vector<1x72xf32>
    %10 = vector.broadcast %9 : vector<1x72xf32> to vector<10x72xf32>
    %11 = arith.addf %6, %10 : vector<10x72xf32>
    %12 = tpu.iota {dimensions = array<i32: 0>} : vector<10x72xi32>
    %c0_i32 = arith.constant 0 : i32
    %13 = arith.cmpi eq, %arg1, %c0_i32 : i32
    %c0_i32_7 = arith.constant 0 : i32
    %14 = vector.broadcast %c0_i32_7 : i32 to vector<10x72xi32>
    %15 = arith.cmpi eq, %12, %14 : vector<10x72xi32>
    %16 = vector.broadcast %13 : i1 to vector<10x72xi1>
    %17 = arith.andi %16, %15 : vector<10x72xi1>
    %c1_i32 = arith.constant 1 : i32
    %18 = arith.cmpi eq, %arg1, %c1_i32 : i32
    %c9_i32 = arith.constant 9 : i32
    %19 = vector.broadcast %c9_i32 : i32 to vector<10x72xi32>
    %20 = arith.cmpi eq, %12, %19 : vector<10x72xi32>
    %21 = vector.broadcast %18 : i1 to vector<10x72xi1>
    %22 = arith.andi %21, %20 : vector<10x72xi1>
    %23 = arith.ori %17, %22 : vector<10x72xi1>
    %cst = arith.constant 0.000000e+00 : f32
    %24 = vector.broadcast %cst : f32 to vector<10x72xf32>
    %25 = arith.select %23, %24, %11 : vector<10x72xi1>, vector<10x72xf32>
    %cst_8 = arith.constant 0.000000e+00 : f32
    %26 = vector.broadcast %cst_8 : f32 to vector<8x128xf32>
    %27 = vector.extract_strided_slice %25 {offsets = [0, 0], sizes = [8, 72], strides = [1, 1]} : vector<10x72xf32> to vector<8x72xf32>
    %c0_9 = arith.constant 0 : index
    %c0_10 = arith.constant 0 : index
    %c0_11 = arith.constant 0 : index
    %28 = vector.load %arg3[%c0_9, %c0_10, %c0_11] : memref<3x72x128xf32, #tpu.memory_space<vmem>>, vector<1x72x128xf32>
    %29 = vector.shape_cast %28 : vector<1x72x128xf32> to vector<72x128xf32>
    %cst_12 = arith.constant dense<0.000000e+00> : vector<8x128xf32>
    %30 = tpu.matmul %27, %29, %cst_12 {dimension_numbers = #tpu.dot_dimension_numbers<[1], [0], [0], [1], [0, 0, 1, 1], [], []>} : vector<8x72xf32>, vector<72x128xf32>, vector<8x128xf32> -> vector<8x128xf32>
    %31 = arith.addf %26, %30 : vector<8x128xf32>
    %32 = vector.extract_strided_slice %25 {offsets = [1, 0], sizes = [8, 72], strides = [1, 1]} : vector<10x72xf32> to vector<8x72xf32>
    %c1 = arith.constant 1 : index
    %c0_13 = arith.constant 0 : index
    %c0_14 = arith.constant 0 : index
    %33 = vector.load %arg3[%c1, %c0_13, %c0_14] : memref<3x72x128xf32, #tpu.memory_space<vmem>>, vector<1x72x128xf32>
    %34 = vector.shape_cast %33 : vector<1x72x128xf32> to vector<72x128xf32>
    %cst_15 = arith.constant dense<0.000000e+00> : vector<8x128xf32>
    %35 = tpu.matmul %32, %34, %cst_15 {dimension_numbers = #tpu.dot_dimension_numbers<[1], [0], [0], [1], [0, 0, 1, 1], [], []>} : vector<8x72xf32>, vector<72x128xf32>, vector<8x128xf32> -> vector<8x128xf32>
    %36 = arith.addf %31, %35 : vector<8x128xf32>
    %37 = vector.extract_strided_slice %25 {offsets = [2, 0], sizes = [8, 72], strides = [1, 1]} : vector<10x72xf32> to vector<8x72xf32>
    %c2 = arith.constant 2 : index
    %c0_16 = arith.constant 0 : index
    %c0_17 = arith.constant 0 : index
    %38 = vector.load %arg3[%c2, %c0_16, %c0_17] : memref<3x72x128xf32, #tpu.memory_space<vmem>>, vector<1x72x128xf32>
    %39 = vector.shape_cast %38 : vector<1x72x128xf32> to vector<72x128xf32>
    %cst_18 = arith.constant dense<0.000000e+00> : vector<8x128xf32>
    %40 = tpu.matmul %37, %39, %cst_18 {dimension_numbers = #tpu.dot_dimension_numbers<[1], [0], [0], [1], [0, 0, 1, 1], [], []>} : vector<8x72xf32>, vector<72x128xf32>, vector<8x128xf32> -> vector<8x128xf32>
    %41 = arith.addf %36, %40 : vector<8x128xf32>
    %cst_19 = arith.constant 0.000000e+00 : f32
    %42 = vector.broadcast %cst_19 : f32 to vector<8x128xf32>
    %43 = arith.maximumf %41, %42 : vector<8x128xf32>
    %c0_20 = arith.constant 0 : index
    %c0_21 = arith.constant 0 : index
    %c0_22 = arith.constant 0 : index
    %44 = vector.load %arg6[%c0_20, %c0_21, %c0_22] : memref<1x8x128xf32, #tpu.memory_space<vmem>>, vector<1x8x128xf32>
    %45 = vector.shape_cast %44 : vector<1x8x128xf32> to vector<8x128xf32>
    %46 = vector.shape_cast %43 : vector<8x128xf32> to vector<1x8x128xf32>
    tpu.vector_store %arg6[%c0_20, %c0_21, %c0_22], %46 {strides = array<i32>} : memref<1x8x128xf32, #tpu.memory_space<vmem>>, vector<1x8x128xf32>,
    return
  }
  func.func @transform_0(%arg0: i32, %arg1: i32) -> (i32, i32, i32, i32) {
    %c0_i32 = arith.constant 0 : i32
    %c0_i32_0 = arith.constant 0 : i32
    %c0_i32_1 = arith.constant 0 : i32
    return %arg0, %arg1, %c0_i32, %c0_i32_0 : i32, i32, i32, i32
  }
  func.func @transform_1(%arg0: i32, %arg1: i32) -> (i32, i32, i32) {
    %c0_i32 = arith.constant 0 : i32
    %c0_i32_0 = arith.constant 0 : i32
    %c0_i32_1 = arith.constant 0 : i32
    %c0_i32_2 = arith.constant 0 : i32
    return %c0_i32, %c0_i32_0, %c0_i32_1 : i32, i32, i32
  }
  func.func @transform_2(%arg0: i32, %arg1: i32) -> (i32, i32) {
    %c0_i32 = arith.constant 0 : i32
    %c0_i32_0 = arith.constant 0 : i32
    %c0_i32_1 = arith.constant 0 : i32
    return %c0_i32, %c0_i32_0 : i32, i32
  }
  func.func @transform_3(%arg0: i32, %arg1: i32) -> (i32, i32) {
    %c0_i32 = arith.constant 0 : i32
    %c0_i32_0 = arith.constant 0 : i32
    %c0_i32_1 = arith.constant 0 : i32
    return %c0_i32, %c0_i32_0 : i32, i32
  }
  func.func @transform_4(%arg0: i32, %arg1: i32) -> (i32, i32, i32) {
    %c0_i32 = arith.constant 0 : i32
    %c0_i32_0 = arith.constant 0 : i32
    return %arg0, %arg1, %c0_i32 : i32, i32, i32
  }
}

</mosaic_0001>

<bundles_post_ra>
// kernel: tile.12
= control target key start
LH: loop header
LB: loop body
LE: loop exit
PB: predicated region body
PF: predicated region fallthrough
CT: control target
= control target key end

     0   :  { %s34_s0 = inlined_call_operand.vmem [shape: f32[4], index: 0, kind: input, shape index: {}]   ;;  %s35_s1 = inlined_call_operand.vmem [shape: f32[18,4], index: 1, kind: output, shape index: {}]  }
   0x1   :  { %v4_v0 = vld [vmem:[%s34_s0] ss:$0 sm:$0xff] }
   0x2   :  { %5 = vst [vmem:[%s35_s1] sm:$0xff] %v4_v0  ;;  %10 = vst [vmem:[%s35_s1 + $0x8] sm:$0xff] %v4_v0 }
   0x3   :  { %11 = vst [vmem:[%s35_s1 + $0x10] sm:$0xff] %v4_v0 }

// kernel: single_layer.1
= control target key start
LH: loop header
LB: loop body
LE: loop exit
PB: predicated region body
PF: predicated region fallthrough
CT: control target
= control target key end

     0   :  { %s860_s15 = smov 0   ;;  %s862_s16 = smov 0   ;;  %s1051_s0 = inlined_call_operand.vmem [shape: f32[2,2,10,72], index: 0, kind: input, shape index: {}]   ;;  %s1052_s1 = inlined_call_operand.vmem [shape: f32[3,72,128], index: 1, kind: input, shape index: {}]   ;;  %s1053_s2 = inlined_call_operand.vmem [shape: f32[1,72], index: 2, kind: input, shape index: {}]   ;;  %s1054_s3 = inlined_call_operand.vmem [shape: f32[1,72], index: 3, kind: input, shape index: {}]   ;;  %s1055_s4 = inlined_call_operand.vmem [shape: f32[2,16,128], index: 4, kind: output, shape index: {}]  }
   0x1   :  { %s864_s17 = smov 0   ;;  %s866_s18 = smov 0  }
   0x2   :  { %s868_s19 = smov 0  }
   0x3 LB: > { %s23_s20 = sadd.s32 1, %s823_s17  ;;  %s26_s21 = sadd.s32 1, %s827_s18  ;;  %s831_s19 = sphi %s868_s19, %s14_s19   ;;  %s827_s18 = sphi %s866_s18, %s1059_s18   ;;  %s823_s17 = sphi %s864_s17, %s1058_s17   ;;  %s819_s16 = sphi %s862_s16, %s1057_s16   ;;  %s815_s15 = sphi %s860_s15, %s1056_s15  }
   0x4   : > { %p24_p0 = scmp.ge.s32.totalorder %s23_s20, 2  ;;  %p627_p1 = scmp.ge.s32.totalorder %s831_s19, 1 }
   0x5   : > { %p182_p2 = scmp.lt.s32.totalorder %s831_s19, 5 }
   0x6   : > { %s1061_s20 = smov (%p24_p0, %s23_s20), 0  ;;  %s1063_s21 = smov (!%p24_p0, %s26_s21), %s827_s18 }
   0x7   : > { %p183_p3 = pnand %p627_p1, %p182_p2  ;;  %p28_p4 = scmp.ge.s32.totalorder %s1063_s21, 2 }
   0x8   : > { %p215_p5 = scmp.lt.s32.totalorder (!%p183_p3), %s819_s16, 1  ;;  %p217_p6 = scmp.lt.s32.totalorder (!%p183_p3), %s815_s15, 1 }
   0x9   : > { %s1065_s21 = smov (%p28_p4, %s1063_s21), 0  ;;  %186 = sbr.rel (%p183_p3) target bundleno = 250 (0xfa), region = 36 }
   0xa   : > { %p255_p7 = scmp.eq.s32.totalorder (!%p183_p3), %s815_s15, 0  ;;  %p263_p8 = scmp.eq.s32.totalorder (!%p183_p3), %s815_s15, 1 }
   0xe   : > { %v643_v0 = vld [vmem:[%s1052_s1 + $0x88] sm:$0xff]  ;;  %v283_v1 = vld [vmem:[%s1052_s1 + $0x40] sm:$0xff]  ;;  %v252_v2 = vlaneseq  ;;  %v833_v3 = vmov 0.0   ;;  %v282_v5 = vld [vmem:[%s1052_s1 + $0x38] sm:$0xff]  ;;  %s1067_s16 = smov (!%p215_p5, %s819_s16), 1  ;;  %vm296_vm6 = vcmask 1046528  }
   0xf   : > { %688 = vmatprep.subr.mxu0 %v833_v3  ;;  %709 = vmatprep.subr.mxu1 %v833_v3  ;;  %v642_v4 = vld [vmem:[%s1052_s1 + $0x80] sm:$0xff]  ;;  %v641_v6 = vld [vmem:[%s1052_s1 + $0x78] sm:$0xff]  ;;  %v281_v7 = vld [vmem:[%s1052_s1 + $0x30] sm:$0xff]  ;;  %s918_s8 = scalar_select %p217_p6, %s815_s15, 1  ;;  %vm300_vm7 = vcmask 588800   ;;  %vm834_vm8 = vmmov 0  }
  0x10   : > { %689 = vmatpush3.msra.mxu0 %v643_v0  ;;  %710 = vmatpush3.msra.mxu1 %v283_v1  ;;  %v253_v8 = vshrl.u32 %v252_v2, 7  ;;  %s629_s9 = sshll.u32 %s1067_s16, 2  ;;  %v640_v9 = vld [vmem:[%s1052_s1 + $0x70] sm:$0xff]  ;;  %v280_v10 = vld [vmem:[%s1052_s1 + $0x28] sm:$0xff]  ;;  %v279_v12 = vld [vmem:[%s1052_s1 + $0x20] sm:$0xff]  ;;  %vm455_vm9 = vcmask 1045504  }
  0x11   : > { %690 = vmatprep.subr.mxu0 %v833_v3  ;;  %711 = vmatprep.subr.mxu1 %v833_v3  ;;  %s628_s14 = sshll.u32 %s918_s8, 1  ;;  %v639_v11 = vld [vmem:[%s1052_s1 + $0x68] sm:$0xff]  ;;  %v633_v13 = vld [vmem:[%s1053_s2] ss:$0 sm:$0xff]  ;;  %v278_v17 = vld [vmem:[%s1052_s1 + $0x18] sm:$0xff]  ;;  %s631_s7 = sshll.u32 %s1067_s16, 1 }
  0x12   : > { %691 = vmatpush3.msra.mxu0 %v642_v4  ;;  %712 = vmatpush3.msra.mxu1 %v282_v5  ;;  %s221_s22 = sadd.s32 %s629_s9, %s628_s14  ;;  %v254_v14 = vadd.s32 8, %v253_v8  ;;  %v638_v15 = vld [vmem:[%s1052_s1 + $0x60] sm:$0xff]  ;;  %vm256_vm0 = vcmp.eq.s32.totalorder %v253_v8, 0  ;;  %v637_v22 = vld [vmem:[%s1052_s1 + $0x58] sm:$0xff]  ;;  %v277_v23 = vld [vmem:[%s1052_s1 + $0x10] sm:$0xff] }
  0x13   : > { %692 = vmatprep.subr.mxu0 %v833_v3  ;;  %713 = vmatprep.subr.mxu1 %v833_v3  ;;  %s630_s27 = sshll.u32 %s221_s22, 3  ;;  %v634_v16 = vld [vmem:[%s1054_s3] ss:$0 sm:$0xff]  ;;  %v636_v28 = vld [vmem:[%s1052_s1 + $0x50] sm:$0xff]  ;;  %v276_v29 = vld [vmem:[%s1052_s1 + $0x8] sm:$0xff] }
  0x14   : > { %693 = vmatpush3.msra.mxu0 %v641_v6  ;;  %714 = vmatpush3.msra.mxu1 %v281_v7  ;;  %s223_s9 = scalar_lea.vmem %s1051_s0, %s630_s27  ;;  %vm265_vm1 = vcmp.eq.s32.totalorder %v254_v14, 9  ;;  %v635_v31 = vld [vmem:[%s1052_s1 + $0x48] sm:$0xff]  ;;  %v275_v35 = vld [vmem:[%s1052_s1] sm:$0xff]  ;;  %v654_v37 = vld [vmem:[%s1052_s1 + $0xd0] sm:$0xff] }
  0x15   : > { %694 = vmatprep.subr.mxu0 %v833_v3  ;;  %715 = vmatprep.subr.mxu1 %v833_v3  ;;  %v232_v18 = vld [vmem:[%s223_s9] sm:$0xff]  ;;  %v233_v19 = vld [vmem:[%s223_s9 + $0x8] sm:$0x3]  ;;  %s258_s14 = scalar_select %p255_p7, 1, 0  ;;  %v651_v40 = vld [vmem:[%s1052_s1 + $0xb8] sm:$0xff] }
  0x16   : > { %695 = vmatpush3.msra.mxu0 %v640_v9  ;;  %716 = vmatpush3.msra.mxu1 %v280_v10  ;;  %v241_v20 = vmul.f32 %v633_v13, %v232_v18  ;;  %v242_v21 = vmul.f32 %v633_v13, %v233_v19  ;;  %s266_s22 = scalar_select %p263_p8, 1, 0  ;;  %v653_v38 = vld [vmem:[%s1052_s1 + $0xc8] sm:$0xff]  ;;  %v652_v39 = vld [vmem:[%s1052_s1 + $0xc0] sm:$0xff]  ;;  %v650_v41 = vld [vmem:[%s1052_s1 + $0xb0] sm:$0xff] }
  0x17   : > { %696 = vmatprep.subr.mxu0 %v833_v3  ;;  %717 = vmatprep.subr.mxu1 %v833_v3  ;;  %v259_v24 = vstv %s258_s14  ;;  %v649_v42 = vld [vmem:[%s1052_s1 + $0xa8] sm:$0xff]  ;;  %v648_v43 = vld [vmem:[%s1052_s1 + $0xa0] sm:$0xff]  ;;  %v647_v46 = vld [vmem:[%s1052_s1 + $0x98] sm:$0xff]  ;;  %s229_s9 = sadd.s32 %s631_s7, %s918_s8 }
  0x18   : > { %697 = vmatpush3.msra.mxu0 %v639_v11  ;;  %718 = vmatpush3.msra.mxu1 %v279_v12  ;;  %v250_v25 = vadd.f32 %v634_v16, %v241_v20  ;;  %v251_v26 = vadd.f32 %v634_v16, %v242_v21  ;;  %vm260_vm2 = vcmp.eq.s32.totalorder %v259_v24, 1  ;;  %v267_v27 = vstv %s266_s22  ;;  %v646_v47 = vld [vmem:[%s1052_s1 + $0x90] sm:$0xff]  ;;  %s632_s10 = sshll.u32 %s229_s9, 3 }
  0x19   : > { %698 = vmatprep.subr.mxu0 %v833_v3  ;;  %719 = vmatprep.subr.mxu1 %v833_v3  ;;  %vm261_vm3 = vmand %vm260_vm2, %vm256_vm0  ;;  %vm268_vm4 = vcmp.eq.s32.totalorder %v267_v27, 1  ;;  %s231_s13 = scalar_lea.vmem %s1055_s4, %s632_s10 }
  0x1a   : > { %699 = vmatpush3.msra.mxu0 %v638_v15  ;;  %720 = vmatpush3.msra.mxu1 %v278_v17  ;;  %vm270_vm5 = vmand %vm268_vm4, %vm265_vm1  ;;  %v273_v30 = vsel %vm261_vm3, 0.0, %v250_v25 }
  0x1b   : > { %700 = vmatprep.subr.mxu0 %v833_v3  ;;  %721 = vmatprep.subr.mxu1 %v833_v3  ;;  %v274_v32 = vsel %vm270_vm5, 0.0, %v251_v26  ;;  %v297_v33 = vrot.slane %v273_v30, 1  ;;  %v456_v45 = vrot.slane %v273_v30, 2 }
  0x1c   : > { %701 = vmatpush3.msra.mxu0 %v637_v22  ;;  %722 = vmatpush3.msra.mxu1 %v277_v23  ;;  %v298_v34 = vrot.slane %v274_v32, 1  ;;  %v457_v44 = vrot.slane %v274_v32, 2 }
  0x1d   : > { %702 = vmatprep.subr.mxu0 %v833_v3  ;;  %723 = vmatprep.subr.mxu1 %v833_v3 }
  0x1e   : > { %703 = vmatpush3.msra.mxu0 %v636_v28  ;;  %724 = vmatpush3.msra.mxu1 %v276_v29  ;;  %v299_v36 = vsel %vm296_vm6, %v297_v33, %v298_v34  ;;  %v458_v48 = vsel %vm455_vm9, %v456_v45, %v457_v44 }
  0x1f   : > { %704 = vmatprep.subr.mxu0 %v833_v3  ;;  %706 = vmatprep.mubr.msk.f32.mxu0 %vm834_vm8, %v833_v3 }
  0x20   : > { %705 = vmatpush3.msra.mxu0 %v635_v31  ;;  %725 = vmatprep.subr.mxu1 %v833_v3 }
  0x21   : > { %707 = vmatmul.mubr.msk.f32.vlgmr.msra.gmra.mxu0 %vm300_vm7, %v299_v36  ;;  %726 = vmatpush3.msra.mxu1 %v275_v35 }
  0x22   : > { %727 = vmatprep.mubr.msk.f32.mxu1 %vm834_vm8, %v833_v3  ;;  %730 = vmatprep.subr.mxu0 %v833_v3 }
  0x23   : > { %728 = vmatmul.mubr.msk.f32.vlgmr.msra.gmra.mxu1 %vm300_vm7, %v273_v30  ;;  %731 = vmatpush3.msra.mxu0 %v654_v37 }
  0x24   : > { %732 = vmatprep.subr.mxu0 %v833_v3  ;;  %748 = vmatprep.mubr.msk.f32.mxu0 %vm834_vm8, %v833_v3 }
  0x25   : > { %733 = vmatpush3.msra.mxu0 %v653_v38 }
  0x26   : > { %734 = vmatprep.subr.mxu0 %v833_v3 }
  0x27   : > { %735 = vmatpush3.msra.mxu0 %v652_v39 }
  0x28   : > { %736 = vmatprep.subr.mxu0 %v833_v3 }
  0x29   : > { %737 = vmatpush3.msra.mxu0 %v651_v40 }
  0x2a   : > { %738 = vmatprep.subr.mxu0 %v833_v3 }
  0x2b   : > { %739 = vmatpush3.msra.mxu0 %v650_v41 }
  0x2c   : > { %740 = vmatprep.subr.mxu0 %v833_v3 }
  0x2d   : > { %741 = vmatpush3.msra.mxu0 %v649_v42 }
  0x2e   : > { %742 = vmatprep.subr.mxu0 %v833_v3 }
  0x2f   : > { %743 = vmatpush3.msra.mxu0 %v648_v43 }
  0x30   : > { %744 = vmatprep.subr.mxu0 %v833_v3 }
  0x31   : > { %745 = vmatpush3.msra.mxu0 %v647_v46 }
  0x32   : > { %746 = vmatprep.subr.mxu0 %v833_v3 }
  0x33   : > { %747 = vmatpush3.msra.mxu0 %v646_v47 }
  0x34   : > { %749 = vmatmul.mubr.msk.f32.vlgmr.msra.gmra.mxu0 %vm300_vm7, %v458_v48 }
  0xe1   : > { %v369_v49 = vpop.f32.mrf.mxu0 }
  0xe3   : > { %v441_v50 = vpop.f32.mrf.mxu1  ;;  %v708_v51 = vpop.f32.mrf.mxu0 }
  0xe4   : > { %v442_v53 = vadd.f32 %v441_v50, %v369_v49 }
  0xe5   : > { %v729_v52 = vpop.f32.mrf.mxu1 }
  0xf4   : > { %v527_v54 = vpop.f32.mrf.mxu0 }
  0xf5   : > { %v531_v55 = vadd.f32 %v527_v54, %v442_v53 }
  0xf6   : > { %v750_v56 = vpop.f32.mrf.mxu0 }
  0xf7   : > { %v532_v57 = vmax.f32 %v531_v55, 0.0 }
  0xf9   : > { %533 = vst [vmem:[%s231_s13] sm:$0xff] %v532_v57 }
  0xfa PF: > { %s14_s19 = sadd.s32 1, %s831_s19   ;;  %s1056_s15 = smov %s823_s17 }
  0xfb   : > { %p11_p9 = scmp.ge.s32.totalorder %s14_s19, 6   ;;  %s1057_s16 = smov %s827_s18 }
  0xfc   : > { %s1058_s17 = smov %s1061_s20  ;;  %s1059_s18 = smov %s1065_s21 }
  0xfd   :  { %13 = sbr.rel (!%p11_p9) target bundleno = 3 (0x3), region = 68 }

</bundles_post_ra>
